<compile_context>
chip_gen: v6e
topology: v6e:2x2x1
jax: 0.10.0
libtpu: 0.0.40
codegen_flags: <defaults>
</compile_context>

<pallas_src>
import jax
import jax.numpy as jnp
from jax import lax
from jax.experimental import pallas as pl
from jax.experimental.pallas import tpu as pltpu


def _make_kernel(DH, DW, Wh, L, inv_count, eps, neg_slope, has_seam):
    """Fused grouped-conv + InstanceNorm + LeakyReLU kernel for one (n, C_out-tile)."""
    n_groups = DH * DW

    def _compute(x_ref, w_ref, o_ref, mask):
        # x_ref: (1, s*s*C_in, M) phase-decomposed padded input (one sample)
        # w_ref: (n_groups, tc, s*s*C_in) one weight slab per spatial offset group
        # o_ref: (1, tc, L)
        acc = None
        for g in range(n_groups):
            off = (g // DW) * Wh + (g % DW)                 # static lane offset
            xg = x_ref[0, :, pl.ds(off, L)]                 # (s*s*C_in, L), no copy
            d = jnp.dot(w_ref[g], xg, preferred_element_type=jnp.float32)
            acc = d if acc is None else acc + d             # (tc, L) f32

        # InstanceNorm2d (affine=False) over valid spatial positions, one pass.
        if mask is not None:                                # seam columns -> 0 in stats
            ym = acc * mask
            s1 = jnp.sum(ym, axis=-1, keepdims=True)        # (tc, 1)
            s2 = jnp.sum(ym * acc, axis=-1, keepdims=True)
        else:
            s1 = jnp.sum(acc, axis=-1, keepdims=True)
            s2 = jnp.sum(acc * acc, axis=-1, keepdims=True)
        mean = s1 * inv_count
        var = jnp.maximum(s2 * inv_count - mean * mean, 0.0)   # clamp: one-pass cancellation
        y = (acc - mean) * lax.rsqrt(var + eps)

        # LeakyReLU(0.2)
        o_ref[0] = jnp.where(y >= 0, y, neg_slope * y).astype(o_ref.dtype)

    if has_seam:
        def kernel(x_ref, w_ref, m_ref, o_ref):
            _compute(x_ref, w_ref, o_ref, m_ref[...])
    else:
        def kernel(x_ref, w_ref, o_ref):
            _compute(x_ref, w_ref, o_ref, None)
    return kernel


def conv_block_pallas(x, weight, bias, stride, *, compute_dtype=None, cout_tile=None,
                      eps=1e-5, negative_slope=0.2):
    """x: (N, C_in, H, W) NCHW; weight: (C_out, C_in, 4, 4); bias: (C_out,).

    `bias` is accepted for signature parity with the PyTorch module but unused: a
    per-channel constant added before InstanceNorm2d with instance statistics is
    exactly cancelled by the mean subtraction (would NOT hold with running stats).
    """
    del bias
    out_dtype = x.dtype
    N, C_in, H, W = x.shape
    C_out, _, KH, KW = weight.shape
    s = int(stride)
    pad = 1
    H_out = (H + 2 * pad - KH) // s + 1
    W_out = (W + 2 * pad - KW) // s + 1

    # Cast BEFORE the pad / transpose so the wrapper-side HBM pass and the kernel's
    # x DMA are both done at the narrow width.
    if compute_dtype is not None:
        x = x.astype(compute_dtype)
        weight = weight.astype(compute_dtype)

    # Reflect pad (PyTorch padding_mode='reflect'); then zero-pad spatial dims up to
    # a multiple of the stride so the phase decomposition is rectangular.  The zero
    # rows/cols are never read by valid output positions.
    x_pad = jnp.pad(x, ((0, 0), (0, 0), (pad, pad), (pad, pad)), mode="reflect")
    Hp, Wp = H + 2 * pad, W + 2 * pad
    Hh, Wh = -(-Hp // s), -(-Wp // s)                       # ceil division
    x_pad = jnp.pad(x_pad, ((0, 0), (0, 0), (0, Hh * s - Hp), (0, Wh * s - Wp)))

    # Phase decomposition:
    #   xph[n, (sh*s+sw)*C_in + ci, r*Wh + c] = x_pad[n, ci, r*s + sh, c*s + sw]
    M = Hh * Wh
    xph = (x_pad.reshape(N, C_in, Hh, s, Wh, s)
                .transpose(0, 3, 5, 1, 2, 4)
                .reshape(N, s * s * C_in, M))

    # Regroup the KH*KW taps by spatial offset (dh, dw): one (C_out, s*s*C_in) weight
    # slab per group -> contraction depth s*s*C_in per matmul.
    DH, DW = -(-KH // s), -(-KW // s)
    K_grp = s * s * C_in
    w_pad = jnp.pad(weight, ((0, 0), (0, 0), (0, DH * s - KH), (0, DW * s - KW)))
    w_grp = (w_pad.reshape(C_out, C_in, DH, s, DW, s)
                  .transpose(2, 4, 0, 3, 5, 1)              # (dh, dw, co, sh, sw, ci)
                  .reshape(DH * DW, C_out, K_grp))

    # Flattened output positions p = ho*Wh + wo; columns with wo >= W_out are "seam"
    # garbage masked from the norm stats and discarded afterwards.
    L = (H_out - 1) * Wh + W_out
    has_seam = (W_out != Wh)

    # Second parallel grid axis over C_out tiles: keeps both v7x cores busy at N == 1.
    if cout_tile is None:
        cout_tile = C_out // 2 if (N == 1 and C_out % 16 == 0) else C_out
    assert C_out % cout_tile == 0 and (cout_tile == C_out or cout_tile % 8 == 0)
    n_ct = C_out // cout_tile

    kernel = _make_kernel(DH, DW, Wh, L, 1.0 / float(H_out * W_out),
                          eps, negative_slope, has_seam)

    in_specs = [
        pl.BlockSpec((1, s * s * C_in, M), lambda n, ct: (n, 0, 0)),
        pl.BlockSpec((DH * DW, cout_tile, K_grp), lambda n, ct: (0, ct, 0)),
    ]
    operands = [xph, w_grp]
    if has_seam:
        mask = (jnp.arange(L, dtype=jnp.int32) % Wh < W_out)
        mask = mask.astype(jnp.float32).reshape(1, L)
        in_specs.append(pl.BlockSpec((1, L), lambda n, ct: (0, 0)))
        operands.append(mask)

    # VMEM budget from the actual block footprint, capped at 48 MiB (v7x has only
    # 64 MiB physical per TensorCore; leave headroom for double-buffering/scratch).
    isz = xph.dtype.itemsize
    x_blk = s * s * C_in * M * isz
    w_blk = DH * DW * cout_tile * K_grp * isz
    o_blk = cout_tile * L * jnp.dtype(out_dtype).itemsize
    m_blk = L * 4 if has_seam else 0
    acc_b = cout_tile * L * 4
    vmem_need = 2 * (x_blk + o_blk) + w_blk + m_blk + acc_b
    vmem_limit = int(min(48 * 1024 * 1024, max(2 * vmem_need, 32 * 1024 * 1024)))

    out_flat = pl.pallas_call(
        kernel,
        out_shape=jax.ShapeDtypeStruct((N, C_out, L), out_dtype),
        grid_spec=pltpu.PrefetchScalarGridSpec(
            num_scalar_prefetch=0,
            grid=(N, n_ct),
            in_specs=in_specs,
            out_specs=pl.BlockSpec((1, cout_tile, L), lambda n, ct: (n, ct, 0)),
        ),
        compiler_params=pltpu.CompilerParams(
            dimension_semantics=("parallel", "parallel"),
            vmem_limit_bytes=vmem_limit,
        ),
    )(*operands)

    # (N, C_out, L) -> (N, C_out, H_out, W_out): pad to full rows, reshape, drop seams.
    out = jnp.pad(out_flat, ((0, 0), (0, 0), (0, H_out * Wh - L)))
    out = out.reshape(N, C_out, H_out, Wh)[..., :W_out]
    return out


def _reference(x, weight, bias, stride):
    """Pure-JAX reference (matches the PyTorch module, including the bias)."""
    pad = 1
    x_pad = jnp.pad(x, ((0, 0), (0, 0), (pad, pad), (pad, pad)), mode="reflect")
    y = lax.conv_general_dilated(
        x_pad, weight, window_strides=(stride, stride), padding="VALID",
        dimension_numbers=("NCHW", "OIHW", "NCHW"))
    y = y + bias.reshape(1, -1, 1, 1)
    mean = jnp.mean(y, axis=(2, 3), keepdims=True)
    var = jnp.mean((y - mean) ** 2, axis=(2, 3), keepdims=True)
    y = (y - mean) * lax.rsqrt(var + 1e-5)
    return jnp.where(y >= 0, y, 0.2 * y)


if __name__ == "__main__":
    key = jax.random.PRNGKey(0)
    configs = [
        # (N, C_in, C_out, H, W, stride)
        (2, 4, 8, 16, 16, 2),    # stride 2: 4 offset groups, K = s*s*C_in, grid (2, 1)
        (2, 4, 8, 16, 16, 1),    # stride 1: 16 offset groups
        (1, 4, 16, 16, 16, 2),   # N == 1: C_out split over the 2nd parallel grid axis
    ]
    for (N, C_in, C_out, H, W, stride) in configs:
        key, kx, kw, kb = jax.random.split(key, 4)
        x = jax.random.normal(kx, (N, C_in, H, W), dtype=jnp.float32)
        weight = 0.1 * jax.random.normal(kw, (C_out, C_in, 4, 4), dtype=jnp.float32)
        bias = 0.1 * jax.random.normal(kb, (C_out,), dtype=jnp.float32)

        ref = _reference(x, weight, bias, stride)
        H_out = (H + 2 - 4) // stride + 1
        W_out = (W + 2 - 4) // stride + 1

        # Default (f32) path: faithful to the PyTorch module numerics.
        out = conv_block_pallas(x, weight, bias, stride)
        jax.block_until_ready(out)
        assert out.shape == ref.shape == (N, C_out, H_out, W_out)
        assert jnp.allclose(out, ref, atol=2e-4, rtol=2e-4), (N, C_in, C_out, H, W, stride)

        # bf16 matmul operands (perf path): f32 accumulation + f32 norm math.
        out_bf16 = conv_block_pallas(x, weight, bias, stride, compute_dtype=jnp.bfloat16)
        jax.block_until_ready(out_bf16)
        assert out_bf16.shape == ref.shape
        assert jnp.allclose(out_bf16, ref, atol=5e-2, rtol=5e-2), (N, C_in, C_out, H, W, stride)

    print("KERNEL_OK")
</pallas_src>

<mosaic_0001>
module attributes {stable_mosaic.version = 11 : i64} {
  func.func @kernel(%arg0: i32, %arg1: i32, %arg2: memref<1x16x81xf32, #tpu.memory_space<vmem>>, %arg3: memref<4x8x16xf32, #tpu.memory_space<vmem>>, %arg4: memref<1x71xf32, #tpu.memory_space<vmem>>, %arg5: memref<1x8x71xf32, #tpu.memory_space<vmem>>) attributes {dimension_semantics = [#tpu.dimension_semantics<parallel>, #tpu.dimension_semantics<parallel>], iteration_bounds = array<i64: 2, 1>, scalar_prefetch = 0 : i64, scratch_operands = 0 : i64, tpu.core_type = #tpu.core_type<tc>, window_params = [{transform_indices = @transform_0, window_bounds = array<i64: 1, 16, 81>}, {transform_indices = @transform_1, window_bounds = array<i64: 4, 8, 16>}, {pipeline_mode = #tpu.pipeline_mode<synchronous>, transform_indices = @transform_2, window_bounds = array<i64: 1, 71>}, {transform_indices = @transform_3, window_bounds = array<i64: 1, 8, 71>}]} {
    %c0 = arith.constant 0 : index
    %c0_0 = arith.constant 0 : index
    %0 = vector.load %arg4[%c0, %c0_0] : memref<1x71xf32, #tpu.memory_space<vmem>>, vector<1x71xf32>
    %c0_1 = arith.constant 0 : index
    %c0_2 = arith.constant 0 : index
    %c0_3 = arith.constant 0 : index
    %1 = vector.load %arg2[%c0_1, %c0_2, %c0_3] : memref<1x16x81xf32, #tpu.memory_space<vmem>>, vector<1x16x71xf32>
    %2 = vector.shape_cast %1 : vector<1x16x71xf32> to vector<16x71xf32>
    %c0_4 = arith.constant 0 : index
    %c0_5 = arith.constant 0 : index
    %c0_6 = arith.constant 0 : index
    %3 = vector.load %arg3[%c0_4, %c0_5, %c0_6] : memref<4x8x16xf32, #tpu.memory_space<vmem>>, vector<1x8x16xf32>
    %4 = vector.shape_cast %3 : vector<1x8x16xf32> to vector<8x16xf32>
    %cst = arith.constant dense<0.000000e+00> : vector<8x71xf32>
    %5 = tpu.matmul %4, %2, %cst {dimension_numbers = #tpu.dot_dimension_numbers<[1], [0], [0], [1], [0, 0, 1, 1], [], []>} : vector<8x16xf32>, vector<16x71xf32>, vector<8x71xf32> -> vector<8x71xf32>
    %c0_7 = arith.constant 0 : index
    %c0_8 = arith.constant 0 : index
    %c1 = arith.constant 1 : index
    %6 = vector.load %arg2[%c0_7, %c0_8, %c1] : memref<1x16x81xf32, #tpu.memory_space<vmem>>, vector<1x16x71xf32>
    %7 = vector.shape_cast %6 : vector<1x16x71xf32> to vector<16x71xf32>
    %c1_9 = arith.constant 1 : index
    %c0_10 = arith.constant 0 : index
    %c0_11 = arith.constant 0 : index
    %8 = vector.load %arg3[%c1_9, %c0_10, %c0_11] : memref<4x8x16xf32, #tpu.memory_space<vmem>>, vector<1x8x16xf32>
    %9 = vector.shape_cast %8 : vector<1x8x16xf32> to vector<8x16xf32>
    %cst_12 = arith.constant dense<0.000000e+00> : vector<8x71xf32>
    %10 = tpu.matmul %9, %7, %cst_12 {dimension_numbers = #tpu.dot_dimension_numbers<[1], [0], [0], [1], [0, 0, 1, 1], [], []>} : vector<8x16xf32>, vector<16x71xf32>, vector<8x71xf32> -> vector<8x71xf32>
    %11 = arith.addf %5, %10 : vector<8x71xf32>
    %c0_13 = arith.constant 0 : index
    %c0_14 = arith.constant 0 : index
    %c9 = arith.constant 9 : index
    %12 = vector.load %arg2[%c0_13, %c0_14, %c9] : memref<1x16x81xf32, #tpu.memory_space<vmem>>, vector<1x16x71xf32>
    %13 = vector.shape_cast %12 : vector<1x16x71xf32> to vector<16x71xf32>
    %c2 = arith.constant 2 : index
    %c0_15 = arith.constant 0 : index
    %c0_16 = arith.constant 0 : index
    %14 = vector.load %arg3[%c2, %c0_15, %c0_16] : memref<4x8x16xf32, #tpu.memory_space<vmem>>, vector<1x8x16xf32>
    %15 = vector.shape_cast %14 : vector<1x8x16xf32> to vector<8x16xf32>
    %cst_17 = arith.constant dense<0.000000e+00> : vector<8x71xf32>
    %16 = tpu.matmul %15, %13, %cst_17 {dimension_numbers = #tpu.dot_dimension_numbers<[1], [0], [0], [1], [0, 0, 1, 1], [], []>} : vector<8x16xf32>, vector<16x71xf32>, vector<8x71xf32> -> vector<8x71xf32>
    %17 = arith.addf %11, %16 : vector<8x71xf32>
    %c0_18 = arith.constant 0 : index
    %c0_19 = arith.constant 0 : index
    %c10 = arith.constant 10 : index
    %18 = vector.load %arg2[%c0_18, %c0_19, %c10] : memref<1x16x81xf32, #tpu.memory_space<vmem>>, vector<1x16x71xf32>
    %19 = vector.shape_cast %18 : vector<1x16x71xf32> to vector<16x71xf32>
    %c3 = arith.constant 3 : index
    %c0_20 = arith.constant 0 : index
    %c0_21 = arith.constant 0 : index
    %20 = vector.load %arg3[%c3, %c0_20, %c0_21] : memref<4x8x16xf32, #tpu.memory_space<vmem>>, vector<1x8x16xf32>
    %21 = vector.shape_cast %20 : vector<1x8x16xf32> to vector<8x16xf32>
    %cst_22 = arith.constant dense<0.000000e+00> : vector<8x71xf32>
    %22 = tpu.matmul %21, %19, %cst_22 {dimension_numbers = #tpu.dot_dimension_numbers<[1], [0], [0], [1], [0, 0, 1, 1], [], []>} : vector<8x16xf32>, vector<16x71xf32>, vector<8x71xf32> -> vector<8x71xf32>
    %23 = arith.addf %17, %22 : vector<8x71xf32>
    %24 = vector.broadcast %0 : vector<1x71xf32> to vector<8x71xf32>
    %25 = arith.mulf %23, %24 : vector<8x71xf32>
    %cst_23 = arith.constant dense<0.000000e+00> : vector<8xf32>
    %26 = vector.multi_reduction <add>, %25, %cst_23 [1] : vector<8x71xf32> to vector<8xf32>
    %27 = vector.shape_cast %26 : vector<8xf32> to vector<8x1xf32>
    %28 = arith.mulf %25, %23 : vector<8x71xf32>
    %cst_24 = arith.constant dense<0.000000e+00> : vector<8xf32>
    %29 = vector.multi_reduction <add>, %28, %cst_24 [1] : vector<8x71xf32> to vector<8xf32>
    %30 = vector.shape_cast %29 : vector<8xf32> to vector<8x1xf32>
    %cst_25 = arith.constant 1.562500e-02 : f32
    %31 = vector.broadcast %cst_25 : f32 to vector<8x1xf32>
    %32 = arith.mulf %27, %31 : vector<8x1xf32>
    %cst_26 = arith.constant 1.562500e-02 : f32
    %33 = vector.broadcast %cst_26 : f32 to vector<8x1xf32>
    %34 = arith.mulf %30, %33 : vector<8x1xf32>
    %35 = arith.mulf %32, %32 : vector<8x1xf32>
    %36 = arith.subf %34, %35 : vector<8x1xf32>
    %cst_27 = arith.constant 0.000000e+00 : f32
    %37 = vector.broadcast %cst_27 : f32 to vector<8x1xf32>
    %38 = arith.maximumf %36, %37 : vector<8x1xf32>
    %39 = vector.broadcast %32 : vector<8x1xf32> to vector<8x71xf32>
    %40 = arith.subf %23, %39 : vector<8x71xf32>
    %cst_28 = arith.constant 9.99999974E-6 : f32
    %41 = vector.broadcast %cst_28 : f32 to vector<8x1xf32>
    %42 = arith.addf %38, %41 : vector<8x1xf32>
    %43 = math.rsqrt %42 : vector<8x1xf32>
    %44 = vector.broadcast %43 : vector<8x1xf32> to vector<8x71xf32>
    %45 = arith.mulf %40, %44 : vector<8x71xf32>
    %cst_29 = arith.constant 0.000000e+00 : f32
    %46 = vector.broadcast %cst_29 : f32 to vector<8x71xf32>
    %47 = arith.cmpf oge, %45, %46 : vector<8x71xf32>
    %cst_30 = arith.constant 2.000000e-01 : f32
    %48 = vector.broadcast %cst_30 : f32 to vector<8x71xf32>
    %49 = arith.mulf %48, %45 : vector<8x71xf32>
    %50 = arith.select %47, %45, %49 : vector<8x71xi1>, vector<8x71xf32>
    %c0_31 = arith.constant 0 : index
    %c0_32 = arith.constant 0 : index
    %c0_33 = arith.constant 0 : index
    %51 = vector.load %arg5[%c0_31, %c0_32, %c0_33] : memref<1x8x71xf32, #tpu.memory_space<vmem>>, vector<1x8x71xf32>
    %52 = vector.shape_cast %51 : vector<1x8x71xf32> to vector<8x71xf32>
    %53 = vector.shape_cast %50 : vector<8x71xf32> to vector<1x8x71xf32>
    tpu.vector_store %arg5[%c0_31, %c0_32, %c0_33], %53 {strides = array<i32>} : memref<1x8x71xf32, #tpu.memory_space<vmem>>, vector<1x8x71xf32>,
    return
  }
  func.func @transform_0(%arg0: i32, %arg1: i32) -> (i32, i32, i32) {
    %c0_i32 = arith.constant 0 : i32
    %c0_i32_0 = arith.constant 0 : i32
    %c0_i32_1 = arith.constant 0 : i32
    return %arg0, %c0_i32, %c0_i32_0 : i32, i32, i32
  }
  func.func @transform_1(%arg0: i32, %arg1: i32) -> (i32, i32, i32) {
    %c0_i32 = arith.constant 0 : i32
    %c0_i32_0 = arith.constant 0 : i32
    %c0_i32_1 = arith.constant 0 : i32
    return %c0_i32, %arg1, %c0_i32_0 : i32, i32, i32
  }
  func.func @transform_2(%arg0: i32, %arg1: i32) -> (i32, i32) {
    %c0_i32 = arith.constant 0 : i32
    %c0_i32_0 = arith.constant 0 : i32
    %c0_i32_1 = arith.constant 0 : i32
    return %c0_i32, %c0_i32_0 : i32, i32
  }
  func.func @transform_3(%arg0: i32, %arg1: i32) -> (i32, i32, i32) {
    %c0_i32 = arith.constant 0 : i32
    %c0_i32_0 = arith.constant 0 : i32
    return %arg0, %arg1, %c0_i32 : i32, i32, i32
  }
}

</mosaic_0001>

<bundles_post_ra>
// kernel: tpu_custom_call.1
= control target key start
LH: loop header
LB: loop body
LE: loop exit
PB: predicated region body
PF: predicated region fallthrough
CT: control target
= control target key end

     0   :  { %8 = vsyncpa [#allocation3], 0  ;;  %s1192_s0 = inlined_call_operand.hbm [shape: f32[2,16,81], index: 0, kind: input, shape index: {}]   ;;  %s1193_s1 = inlined_call_operand.hbm [shape: f32[4,8,16], index: 1, kind: input, shape index: {}]   ;;  %s1194_s2 = inlined_call_operand.vmem [shape: f32[1,71], index: 2, kind: input, shape index: {}]   ;;  %s1195_s3 = inlined_call_operand.hbm [shape: f32[2,8,71], index: 3, kind: output, shape index: {}]  }
   0x1   :  { %10 = vsyncpa [#allocation3 + $0x1], 0 }
   0x2   :  { %11 = vsyncpa [#allocation6], 0 }
   0x3   :  { %12 = vsyncpa [#allocation4], 0 }
   0x4   :  { %14 = vsyncpa [#allocation4 + $0x1], 0  ;;  %s998_s12 = smov 0   ;;  %s1000_s13 = smov 0  }
   0x5   :  { %s1002_s14 = smov 0   ;;  %s1004_s15 = smov 0  }
   0x6   :  { %s1006_s16 = smov 0   ;;  %s1008_s17 = smov 0  }
   0x7 LB: > { %s684_s18 = sadd.s32 4294967295, %s966_s17   ;;  %s685_s19 = sadd.s32 4294967294, %s966_s17   ;;  %s966_s17 = sphi %s1008_s17, %s20_s17   ;;  %s962_s16 = sphi %s1006_s16, %s1217_s16   ;;  %s958_s15 = sphi %s1004_s15, %s1216_s15   ;;  %s954_s14 = sphi %s1002_s14, %s1215_s14   ;;  %s950_s13 = sphi %s1000_s13, %s1214_s13   ;;  %s946_s12 = sphi %s998_s12, %s1213_s12  }
   0x8   : > { %p52_p0 = scmp.ne.s32.totalorder %s950_s13, %s946_s12  ;;  %p1032_p1 = scmp.eq.s32.totalorder %s684_s18, 0 }
   0x9   : > { %p1036_p2 = scmp.eq.s32.totalorder %s684_s18, 1  ;;  %p131_p3 = scmp.eq.s32.totalorder %s685_s19, 1 }
   0xa   : > { %p1042_p4 = por %p1032_p1, %p52_p0  ;;  %p686_p5 = scmp.ge.s32.totalorder %s966_s17, 1 }
   0xb   : > { %p1047_p6 = por %p131_p3, %p52_p0  ;;  %p138_p7 = scmp.lt.s32.totalorder %s966_s17, 3 }
   0xc   : > { %s1201_s22 = scalar_select %p1042_p4, 1, 0 }
   0xd   : > { %s1202_s23 = scalar_select %p1047_p6, 1, 0 }
   0xe   : > { %p1052_p8 = pnand %p686_p5, %p138_p7  ;;  %s968_s25 = smov [#allocation5]  }
   0xf   : > { %s152_s26 = sshll.u32 %s968_s25, 4  ;;  %s32_s28 = sadd.s32 1, %s962_s16  ;;  %s153_s26 = int_to_ptr.vmem [resolvable:$true] %s152_s26 }
  0x10   : > { %p754_p9 = pneg %p1052_p8  ;;  %s839_s29 = scalar_lea.vmem %s153_s26, 512 }
  0x11   : > { %p840_p13 = scmp.ne.s32.totalorder %s153_s26, %s839_s29  ;;  %p847_p5 = scmp.lt.s32.totalorder %s153_s26, %s153_s26 }
  0x12   : > { %p1061_p11 = pnand %p754_p9, %p1032_p1  ;;  %p848_p7 = scmp.lt.s32.totalorder %s839_s29, %s839_s29 }
  0x14   : > { %p830_p12 = pneg %p1061_p11  ;;  %p849_p6 = por %p848_p7, %p847_p5 }
  0x16   : > { %p842_p0 = pnand %p840_p13, %p830_p12 }
  0x18   : > { %p843_p3 = pneg %p842_p0 }
  0x1a   : > { %p850_p4 = pnand %p849_p6, %p843_p3 }
  0x1c   : > { %853 = shalt.err (!%p850_p4)
}
  0x1d   : > { %s1197_s30 = smov 128   ;;  %s1198_s4 = smov 8  }
  0x1e   : > { %757 = dma.hbm_to_vmem [thread:$0]  (!%p1061_p11), %s1193_s1, 512, %s153_s26, [#allocation6], %s1197_s30, %s1197_s30, %s1198_s4  }
  0x1f   : > { %p34_p4 = scmp.ge.s32.totalorder %s32_s28, 2  ;;  %s39_s7 = sadd.s32 1, %s954_s14 }
  0x20   : > { %p46_p6 = scmp.ne.s32.totalorder %s954_s14, %s950_s13  ;;  %p47_p9 = scmp.eq.s32.totalorder %s966_s17, 0 }
  0x21   : > { %s1219_s28 = smov (%p34_p4, %s32_s28), 0  ;;  %p767_p0 = scmp.lt.s32.totalorder %s966_s17, 2 }
  0x22   : > { %p1082_p12 = por %p47_p9, %p46_p6  ;;  %p1088_p13 = por %p1036_p2, %p46_p6 }
  0x23   : > { %s36_s10 = ssub.s32 %s962_s16, %s1219_s28  ;;  %s169_s11 = sand.u32 1, %s954_s14  }
  0x24   : > { %p37_p11 = scmp.eq.s32.totalorder %s36_s10, 0  ;;  %s689_s18 = sshll.u32 %s169_s11, 4 }
  0x25   : > { %s705_s25 = sshll.u32 %s962_s16, 8  ;;  %s173_s5 = scalar_lea.vmem [#allocation2], %s689_s18 }
  0x26   : > { %s1097_s19 = scalar_select %p37_p11, %s954_s14, %s39_s7  }
  0x27   : > { %s179_s29 = scalar_lea.hbm %s1192_s0, %s705_s25  ;;  %s180_s6 = sshll.u32 %s173_s5, 4  ;;  %s181_s6 = int_to_ptr.vmem [resolvable:$true] %s180_s6 }
  0x28   : > { %p1105_p2 = pnand %p767_p0, %p1082_p12  ;;  %s170_s30 = scalar_lea.sflag [#allocation3], %s169_s11 }
  0x29   : > { %s867_s10 = scalar_lea.vmem %s181_s6, 256  ;;  %s971_s7 = smov [#allocation2]  }
  0x2a   : > { %p856_p3 = pneg %p1105_p2  ;;  %p868_p5 = scmp.ne.s32.totalorder %s181_s6, %s867_s10 }
  0x2b   : > { %s872_s4 = sshll.u32 %s971_s7, 4  ;;  %s873_s4 = int_to_ptr.vmem [resolvable:$false] %s872_s4 }
  0x2c   : > { %p870_p7 = pnand %p868_p5, %p856_p3  ;;  %s874_s25 = scalar_lea.vmem %s873_s4, 512 }
  0x2d   : > { %p875_p6 = scmp.lt.s32.totalorder %s181_s6, %s873_s4  ;;  %p876_p9 = scmp.lt.s32.totalorder %s874_s25, %s867_s10 }
  0x2e   : > { %p871_p4 = pneg %p870_p7 }
  0x2f   : > { %p877_p11 = por %p876_p9, %p875_p6 }
  0x31   : > { %p878_p10 = pnand %p877_p11, %p871_p4 }
  0x33   : > { %881 = shalt.err (!%p878_p10)
}
  0x34   : > { %s1208_s8 = smov 8   ;;  %s1209_s18 = smov 128  }
  0x35   : > { %761 = dma.hbm_to_vmem [thread:$0]  (!%p1105_p2), %s179_s29, 256, %s181_s6, %s170_s30, %s1209_s18, %s1209_s18, %s1208_s8  }
  0x36   : > { %192 = sbr.rel (%p1052_p8) target bundleno = 569 (0x239), region = 32  ;;  %s1119_s11 = sand.u32 (!%p1052_p8), 1, %s950_s13  }
  0x37   : > { %s693_s4 = sshll.u32 (!%p1052_p8), %s1119_s11, 4  ;;  %s195_s26 = scalar_lea.sflag (!%p1052_p8), [#allocation3], %s1119_s11 }
  0x38   : > { %s198_s27 = scalar_lea.vmem (!%p1052_p8), [#allocation2], %s693_s4  ;;  %p1210_p12 = scmp.ne.s32.totalorder (!%p1052_p8), %s1201_s22, 0 }
  0x3b   : > { %933 = dma.done.wait (%p1210_p12), %s195_s26, 256  }
  0x3c   : > { %935 = vsyncadd (%p1210_p12), %s195_s26, 4294967040 }
  0x3d   : > { %937 = dma.done.wait (%p1032_p1), [#allocation6], 512  }
  0x3e   : > { %939 = vsyncadd (%p1032_p1), [#allocation6], 4294966784  ;;  %v972_v0 = vmov 0.0   ;;  %vm973_vm0 = vmmov 0   ;;  %v227_v1 = vld [vmem:[%s198_s27 + $0x8] sm:$0xff]  ;;  %s974_s24 = smov 127  }
  0x3f   : > { %718 = vmatprep.subr.mxu0 %v972_v0  ;;  %725 = vmatprep.subr.mxu1 %v972_v0  ;;  %s975_s30 = smov 119   ;;  %v226_v2 = vld [vmem:[%s198_s27] sm:$0xff]  ;;  %vm239_vm1 = vcmask 130048   ;;  %s976_s20 = smov 118   ;;  %v230_v6 = vld [vmem:[#allocation5 + $0x8] sm:$0xff]  ;;  %v469_v12 = vld [vmem:[#allocation5 + $0x18] sm:$0xff] }
  0x40   : > { %722 = vmatprep.mubr.msk.f32.mxu0 %vm973_vm0, %v972_v0  ;;  %729 = vmatprep.mubr.msk.f32.mxu1 %vm973_vm0, %v972_v0  ;;  %v228_v3 = vld [vmem:[#allocation5] sm:$0xff]  ;;  %v387_v9 = vld [vmem:[#allocation5 + $0x10] sm:$0xff]  ;;  %vm557_vm2 = vcmask 580608   ;;  %s695_s5 = sshll.u32 %s1119_s11, 3  ;;  %s702_s6 = sshll.u32 %s958_s15, 7 }
  0x41   : > { %235 = vrot.lane.b32.xlu0 %v227_v1, %s974_s24  ;;  %390 = vrot.lane.b32.xlu1 %v227_v1, %s975_s30  ;;  %v700_v22 = vld [vmem:[%s1194_s2] ss:$0 sm:$0xff]  ;;  %s224_s21 = scalar_lea.vmem [#allocation7], %s695_s5  ;;  %s1149_s8 = scalar_lea.hbm %s1195_s3, %s702_s6 }
  0x42   : > { %726 = vmatpush3.msra.mxu1 %v227_v1  ;;  %s593_s10 = sshll.u32 %s224_s21, 4  ;;  %s579_s18 = scalar_lea.sflag [#allocation4], %s1119_s11  ;;  %s594_s10 = int_to_ptr.vmem [resolvable:$true] %s593_s10 }
  0x43   : > { %727 = vmatprep.subr.mxu1 %v972_v0  ;;  %s882_s4 = scalar_lea.vmem %s594_s10, 128  ;;  %s977_s15 = smov [#allocation7]  }
  0x44   : > { %728 = vmatpush3.msra.mxu1 %v226_v2  ;;  %p883_p1 = scmp.ne.s32.totalorder %s594_s10, %s882_s4  ;;  %s886_s26 = sshll.u32 %s977_s15, 4  ;;  %s887_s26 = int_to_ptr.vmem [resolvable:$false] %s886_s26 }
  0x45   : > { %233 = vrot.lane.b32.xlu0 %v226_v2, %s974_s24  ;;  %388 = vrot.lane.b32.xlu1 %v226_v2, %s975_s30  ;;  %s888_s27 = scalar_lea.vmem %s887_s26, 256  ;;  %p889_p0 = scmp.lt.s32.totalorder %s594_s10, %s887_s26 }
  0x46   : > { %730 = vmatmul.mubr.msk.f32.vlgmr.msra.gmra.mxu1 %vm239_vm1, %v228_v3  ;;  %739 = vmatprep.subr.mxu1 %v972_v0  ;;  %p884_p8 = pnand %p883_p1, %p1088_p13  ;;  %p890_p2 = scmp.lt.s32.totalorder %s888_s27, %s882_s4 }
  0x47   : > { %743 = vmatprep.mubr.msk.f32.mxu1 %vm973_vm0, %v972_v0 }
  0x48   : > { %p885_p10 = pneg %p884_p8  ;;  %p891_p3 = por %p890_p2, %p889_p0 }
  0x49   : > { %472 = vrot.lane.b32.xlu0 %v227_v1, %s976_s20  ;;  %470 = vrot.lane.b32.xlu1 %v226_v2, %s976_s20 }
  0x4a   : > { %p892_p5 = pnand %p891_p3, %p885_p10 }
  0xb3   : > { %v236_v4 = vpop.permute.xlu0 %235  ;;  %v391_v5 = vpop.permute.xlu1 %390 }
  0xb4   : > { %719 = vmatpush3.msra.mxu0 %v236_v4 }
  0xb5   : > { %720 = vmatprep.subr.mxu0 %v972_v0 }
  0xb7   : > { %v234_v7 = vpop.permute.xlu0 %233  ;;  %v389_v8 = vpop.permute.xlu1 %388 }
  0xb8   : > { %721 = vmatpush3.msra.mxu0 %v234_v7 }
  0xb9   : > { %723 = vmatmul.mubr.msk.f32.vlgmr.msra.gmra.mxu0 %vm239_vm1, %v230_v6  ;;  %732 = vmatprep.subr.mxu0 %v972_v0 }
  0xba   : > { %733 = vmatpush3.msra.mxu0 %v391_v5  ;;  %736 = vmatprep.mubr.msk.f32.mxu0 %vm973_vm0, %v972_v0 }
  0xbb   : > { %734 = vmatprep.subr.mxu0 %v972_v0  ;;  %v473_v10 = vpop.permute.xlu0 %472  ;;  %v471_v11 = vpop.permute.xlu1 %470 }
  0xbc   : > { %735 = vmatpush3.msra.mxu0 %v389_v8  ;;  %740 = vmatpush3.msra.mxu1 %v473_v10 }
  0xbd   : > { %737 = vmatmul.mubr.msk.f32.vlgmr.msra.gmra.mxu0 %vm239_vm1, %v387_v9  ;;  %741 = vmatprep.subr.mxu1 %v972_v0 }
  0xbe   : > { %742 = vmatpush3.msra.mxu1 %v471_v11 }
  0xbf   : > { %744 = vmatmul.mubr.msk.f32.vlgmr.msra.gmra.mxu1 %vm239_vm1, %v469_v12 }
 0x106   : > { %v382_v13 = vpop.f32.mrf.mxu1 }
 0x108   : > { %v731_v14 = vpop.f32.mrf.mxu1 }
 0x179   : > { %v309_v15 = vpop.f32.mrf.mxu0 }
 0x17a   : > { %v383_v17 = vadd.f32 %v382_v13, %v309_v15 }
 0x17b   : > { %v724_v16 = vpop.f32.mrf.mxu0 }
 0x17d   : > { %v463_v18 = vpop.f32.mrf.mxu0 }
 0x17e   : > { %v467_v19 = vadd.f32 %v463_v18, %v383_v17 }
 0x17f   : > { %v738_v20 = vpop.f32.mrf.mxu0  ;;  %v545_v21 = vpop.f32.mrf.mxu1 }
 0x180   : > { %v549_v23 = vadd.f32 %v545_v21, %v467_v19 }
 0x181   : > { %v745_v24 = vpop.f32.mrf.mxu1 }
 0x182   : > { %v556_v25 = vmul.f32 %v700_v22, %v549_v23 }
 0x184   : > { %v558_v26 = vsel %vm557_vm2, %v556_v25, 0.0  ;;  %v561_v27 = vmul.f32 %v556_v25, %v549_v23 }
 0x185   : > { %559 = vadd.xlane.f32.xlu0 %v558_v26 }
 0x186   : > { %v562_v28 = vsel %vm557_vm2, %v561_v27, 0.0 }
 0x187   : > { %563 = vadd.xlane.f32.xlu1 %v562_v28 }
 0x20e   : > { %v560_v29 = vpop.xlane.xlu0 %559 }
 0x20f   : > { %v565_v30 = vmul.f32 0.015625, %v560_v29 }
 0x210   : > { %v564_v31 = vpop.xlane.xlu1 %563 }
 0x211   : > { %v567_v32 = vmul.f32 %v565_v30, %v565_v30  ;;  %v566_v33 = vmul.f32 0.015625, %v564_v31  ;;  %v570_v37 = vsub.f32 %v549_v23, %v565_v30 }
 0x213   : > { %v568_v34 = vsub.f32 %v566_v33, %v567_v32 }
 0x215   : > { %v569_v35 = vmax.f32 %v568_v34, 0.0 }
 0x217   : > { %v571_v36 = vadd.f32 1e-05, %v569_v35 }
 0x219   : > { %826 = vrsqrt.f32 %v571_v36 }
 0x226   : > { %v827_v38 = vpop.eup %826 }
 0x227   : > { %v573_v39 = vmul.f32 %v827_v38, %v570_v37 }
 0x229   : > { %vm574_vm3 = vcmp.ge.f32.partialorder %v573_v39, 0.0  ;;  %v575_v40 = vmul.f32 0.2, %v573_v39 }
 0x22b   : > { %v576_v41 = vsel %vm574_vm3, %v573_v39, %v575_v40 }
 0x22c   : > { %577 = vst.msk [vmem:[%s224_s21] sm:$0xff] %vm557_vm2, %v576_v41 }
 0x22d   : > { %895 = shalt.err (!%p892_p5)
}
 0x22e   : > { %s896_s24 = scalar_lea.hbm %s1149_s8, 128  ;;  %s900_s20 = scalar_lea.hbm %s1195_s3, 256 }
 0x22f   : > { %p897_p7 = scmp.ne.s32.totalorder %s1149_s8, %s896_s24  ;;  %p901_p9 = scmp.lt.s32.totalorder %s1149_s8, %s1195_s3 }
 0x230   : > { %p902_p11 = scmp.lt.s32.totalorder %s900_s20, %s896_s24 }
 0x231   : > { %p898_p4 = pnand %p897_p7, %p1088_p13 }
 0x232   : > { %p903_p12 = por %p902_p11, %p901_p9 }
 0x233   : > { %p899_p6 = pneg %p898_p4 }
 0x235   : > { %p904_p1 = pnand %p903_p12, %p899_p6 }
 0x237   : > { %907 = shalt.err (!%p904_p1)
}
 0x238   : > { %752 = dma.vmem_to_hbm [thread:$0]  (%p1088_p13), %s594_s10, 128, %s1149_s8, %s579_s18  }
 0x239 PF: > { %s605_s5 = sand.u32 1, %s946_s12   ;;  %p1211_p8 = scmp.ne.s32.totalorder %s1202_s23, 0 }
 0x23a   : > { %p1212_p10 = scmp.ge.s32.totalorder %s966_s17, 2  ;;  %s606_s6 = scalar_lea.sflag [#allocation4], %s605_s5 }
 0x23c   : > { %p763_p0 = pnand %p1212_p10, %p1211_p8 }
 0x23e   : > { %p764_p2 = pneg %p763_p0 }
 0x240   : > { %941 = dma.done.wait (%p764_p2), %s606_s6, 128  }
 0x241   : > { %943 = vsyncadd (%p764_p2), %s606_s6, 4294967168  ;;  %s20_s17 = sadd.s32 1, %s966_s17   ;;  %s1213_s12 = smov %s950_s13 }
 0x242   : > { %p17_p3 = scmp.ge.s32.totalorder %s20_s17, 4   ;;  %s1214_s13 = smov %s954_s14 }
 0x243   : > { %s1215_s14 = smov %s1097_s19  ;;  %s1216_s15 = smov %s962_s16 }
 0x244   : > { %s1217_s16 = smov %s1219_s28  ;;  %19 = sbr.rel (!%p17_p3) target bundleno = 7 (0x7), region = 85 }
 0x249   :  { %611 = vsyncpa [#allocation3], 1 }
 0x24a   :  { %613 = vsyncpa [#allocation3 + $0x1], 1 }
 0x24b   :  { %614 = vsyncpa [#allocation6], 1 }
 0x24c   :  { %615 = vsyncpa [#allocation4], 1 }
 0x24d   :  { %617 = vsyncpa [#allocation4 + $0x1], 1 }

</bundles_post_ra>
